<compile_context>
chip_gen: v7x
topology: tpu7x:2x2x1
jax: 0.10.0
libtpu: 0.0.40
codegen_flags: <defaults>
</compile_context>

<pallas_src>
import jax
import jax.numpy as jnp
from jax import lax
from jax.experimental import pallas as pl
from jax.experimental.pallas import tpu as pltpu


# ----------------------------------------------------------------------------
# Pallas kernel: whole sequence in one invocation
# ----------------------------------------------------------------------------
def _char_decoder_kernel(
    emb_ref,      # (T*Bp, E)   embedded chars, time-major, flattened
    wih_ref,      # (E, 4H)     LSTM input weights (transposed)
    whh_ref,      # (H, 4H)     LSTM recurrent weights (transposed)
    b_ref,        # (1, 4H)     b_ih + b_hh
    wproj_ref,    # (H, Vp)     output projection weights (transposed, V padded)
    bproj_ref,    # (1, Vp)     output projection bias (V padded)
    h0_ref,       # (Bp, H)     initial hidden state (batch padded)
    c0_ref,       # (Bp, H)     initial cell state   (batch padded)
    scores_ref,   # (T*Bp, Vp)  output scores
    hT_ref,       # (Bp, H)     final hidden state
    cT_ref,       # (Bp, H)     final cell state
    xg_sc,        # VMEM (T*Bp, 4H) scratch: precomputed input gates (+bias)
    hs_sc,        # VMEM (T*Bp, H)  scratch: per-step hidden states
):
    TB, _ = emb_ref.shape
    Bp, H = h0_ref.shape
    T = TB // Bp                      # static python int

    # ---- (1) Batched input GEMM for all time steps at once (off the serial chain)
    xg_sc[...] = (
        jnp.dot(emb_ref[...], wih_ref[...], preferred_element_type=jnp.float32)
        + b_ref[...]
    )

    whh = whh_ref[...]                # keep recurrent weights in vregs

    # ---- (2) Serial LSTM recurrence: only h @ W_hh remains per step.
    def step(t, carry):
        h, c = carry
        off = pl.multiple_of(t * Bp, Bp)
        gates = xg_sc[pl.ds(off, Bp), :] + jnp.dot(
            h, whh, preferred_element_type=jnp.float32
        )                              # (Bp, 4H), PyTorch gate order i,f,g,o
        i_g = jax.nn.sigmoid(gates[:, 0 * H:1 * H])
        f_g = jax.nn.sigmoid(gates[:, 1 * H:2 * H])
        g_g = jnp.tanh(gates[:, 2 * H:3 * H])
        o_g = jax.nn.sigmoid(gates[:, 3 * H:4 * H])
        c_new = f_g * c + i_g * g_g
        h_new = o_g * jnp.tanh(c_new)
        hs_sc[pl.ds(off, Bp), :] = h_new
        return (h_new, c_new)

    h_fin, c_fin = lax.fori_loop(
        0, T, step, (h0_ref[...], c0_ref[...]), unroll=True
    )

    # Final LSTM states: written once, after the loop.
    hT_ref[...] = h_fin
    cT_ref[...] = c_fin

    # ---- (3) Batched output projection + one lane-dense store.
    scores_ref[...] = (
        jnp.dot(hs_sc[...], wproj_ref[...], preferred_element_type=jnp.float32)
        + bproj_ref[...]
    )


# ----------------------------------------------------------------------------
# Wrapper: embedding glue + padding + pallas_call
# ----------------------------------------------------------------------------
def _round_up(x, m):
    return ((x + m - 1) // m) * m


def char_decoder_forward(input_ids, params, dec_hidden):
    """Mirror of CharDecoder.forward.

    input_ids:  (T, B) int32
    dec_hidden: tuple of (1, B, H) float32 tensors (h0, c0)
    returns:    scores (T, B, V) float32, (h_T, c_T) each (1, B, H)
    """
    T, B = input_ids.shape
    emb_table = params["emb"]          # (V, E), pad row already zeroed
    E = emb_table.shape[1]
    H = params["whh_t"].shape[0]
    V = params["wproj_t"].shape[1]

    # Pad batch to sublane tile (8) and vocab to lane tile (128) for dense vregs.
    Bp = _round_up(B, 8)
    Vp = _round_up(V, 128)

    # Embedding lookup (glue, not the hot path).
    emb = jnp.take(emb_table, input_ids, axis=0)            # (T, B, E)
    if Bp != B:
        emb = jnp.pad(emb, ((0, 0), (0, Bp - B), (0, 0)))
    emb2d = emb.reshape(T * Bp, E)                          # flatten time into rows

    h0 = dec_hidden[0][0]                                   # (B, H)
    c0 = dec_hidden[1][0]                                   # (B, H)
    if Bp != B:
        h0 = jnp.pad(h0, ((0, Bp - B), (0, 0)))
        c0 = jnp.pad(c0, ((0, Bp - B), (0, 0)))

    wih_t = params["wih_t"]                                 # (E, 4H)
    whh_t = params["whh_t"]                                 # (H, 4H)
    b = (params["bih"] + params["bhh"])[None, :]            # (1, 4H)
    wproj_t = params["wproj_t"]                             # (H, V)
    bproj = params["bproj"]                                 # (V,)
    if Vp != V:
        wproj_t = jnp.pad(wproj_t, ((0, 0), (0, Vp - V)))
        bproj = jnp.pad(bproj, (0, Vp - V))
    bproj = bproj[None, :]                                  # (1, Vp)

    grid_spec = pltpu.PrefetchScalarGridSpec(
        num_scalar_prefetch=0,
        grid=(1,),
        in_specs=[
            pl.BlockSpec((T * Bp, E), lambda i: (0, 0)),        # emb (flattened)
            pl.BlockSpec((E, 4 * H), lambda i: (0, 0)),         # W_ih^T
            pl.BlockSpec((H, 4 * H), lambda i: (0, 0)),         # W_hh^T
            pl.BlockSpec((1, 4 * H), lambda i: (0, 0)),         # b
            pl.BlockSpec((H, Vp), lambda i: (0, 0)),            # W_proj^T (padded)
            pl.BlockSpec((1, Vp), lambda i: (0, 0)),            # b_proj (padded)
            pl.BlockSpec((Bp, H), lambda i: (0, 0)),            # h0 (padded)
            pl.BlockSpec((Bp, H), lambda i: (0, 0)),            # c0 (padded)
        ],
        out_specs=[
            pl.BlockSpec((T * Bp, Vp), lambda i: (0, 0)),       # scores (flattened)
            pl.BlockSpec((Bp, H), lambda i: (0, 0)),            # h_T
            pl.BlockSpec((Bp, H), lambda i: (0, 0)),            # c_T
        ],
        scratch_shapes=[
            pltpu.VMEM((T * Bp, 4 * H), jnp.float32),           # precomputed input gates
            pltpu.VMEM((T * Bp, H), jnp.float32),               # stacked h_t
        ],
    )

    scores_p, h_t, c_t = pl.pallas_call(
        _char_decoder_kernel,
        out_shape=(
            jax.ShapeDtypeStruct((T * Bp, Vp), jnp.float32),
            jax.ShapeDtypeStruct((Bp, H), jnp.float32),
            jax.ShapeDtypeStruct((Bp, H), jnp.float32),
        ),
        grid_spec=grid_spec,
        compiler_params=pltpu.CompilerParams(
            # Single grid step; recurrence is sequential inside the kernel.
            dimension_semantics=("arbitrary",),
            # Explicit VMEM budget (safe on v7x's 64 MiB VMEM as shapes grow).
            vmem_limit_bytes=32 * 1024 * 1024,
        ),
    )(emb2d, wih_t, whh_t, b, wproj_t, bproj, h0, c0)

    # Drop padding, restore (T, B, V) layout.
    scores = scores_p.reshape(T, Bp, Vp)[:, :B, :V]
    h_t = h_t[:B]
    c_t = c_t[:B]
    return scores, (h_t[None], c_t[None])


# ----------------------------------------------------------------------------
# Pure-JAX reference (matches PyTorch LSTM + Linear + Embedding semantics)
# ----------------------------------------------------------------------------
def char_decoder_ref(input_ids, params, dec_hidden):
    emb = jnp.take(params["emb"], input_ids, axis=0)        # (T, B, E)
    H = params["whh_t"].shape[0]
    b = params["bih"] + params["bhh"]

    def step(carry, x):
        h, c = carry
        gates = x @ params["wih_t"] + h @ params["whh_t"] + b
        i_g = jax.nn.sigmoid(gates[:, 0 * H:1 * H])
        f_g = jax.nn.sigmoid(gates[:, 1 * H:2 * H])
        g_g = jnp.tanh(gates[:, 2 * H:3 * H])
        o_g = jax.nn.sigmoid(gates[:, 3 * H:4 * H])
        c_new = f_g * c + i_g * g_g
        h_new = o_g * jnp.tanh(c_new)
        return (h_new, c_new), h_new

    h0, c0 = dec_hidden[0][0], dec_hidden[1][0]
    (h_t, c_t), hs = lax.scan(step, (h0, c0), emb)
    scores = hs @ params["wproj_t"] + params["bproj"]
    return scores, (h_t[None], c_t[None])


# ----------------------------------------------------------------------------
# Deterministic parameter init (shapes from CharDecoder.__init__)
# ----------------------------------------------------------------------------
def init_params(key, v_char, e_char, hidden_size, pad_idx):
    ks = jax.random.split(key, 7)
    s_lstm = 1.0 / jnp.sqrt(hidden_size)
    s_proj = 1.0 / jnp.sqrt(hidden_size)

    emb = jax.random.normal(ks[0], (v_char, e_char), jnp.float32)
    emb = emb.at[pad_idx].set(0.0)     # padding_idx row is zero

    wih = jax.random.uniform(ks[1], (4 * hidden_size, e_char), jnp.float32,
                             -s_lstm, s_lstm)
    whh = jax.random.uniform(ks[2], (4 * hidden_size, hidden_size), jnp.float32,
                             -s_lstm, s_lstm)
    bih = jax.random.uniform(ks[3], (4 * hidden_size,), jnp.float32,
                             -s_lstm, s_lstm)
    bhh = jax.random.uniform(ks[4], (4 * hidden_size,), jnp.float32,
                             -s_lstm, s_lstm)
    wproj = jax.random.uniform(ks[5], (v_char, hidden_size), jnp.float32,
                               -s_proj, s_proj)
    bproj = jax.random.uniform(ks[6], (v_char,), jnp.float32, -s_proj, s_proj)

    return {
        "emb": emb,
        "wih_t": wih.T,        # (E, 4H)
        "whh_t": whh.T,        # (H, 4H)
        "bih": bih,
        "bhh": bhh,
        "wproj_t": wproj.T,    # (H, V)
        "bproj": bproj,
    }


if __name__ == "__main__":
    # Small shapes consistent with CharDecoder.forward
    T, B = 8, 4            # (length, batch)
    HIDDEN = 32
    E_CHAR = 50
    V_CHAR = 30            # len(target_vocab.char2id)
    PAD_IDX = 0            # target_vocab.char2id['<pad>']

    key = jax.random.PRNGKey(0)
    k_par, k_in, k_h, k_c = jax.random.split(key, 4)

    params = init_params(k_par, V_CHAR, E_CHAR, HIDDEN, PAD_IDX)

    input_ids = jax.random.randint(k_in, (T, B), 0, V_CHAR, dtype=jnp.int32)
    dec_hidden = (
        jax.random.normal(k_h, (1, B, HIDDEN), jnp.float32),
        jax.random.normal(k_c, (1, B, HIDDEN), jnp.float32),
    )

    scores, (h_t, c_t) = char_decoder_forward(input_ids, params, dec_hidden)
    jax.block_until_ready((scores, h_t, c_t))

    # Sanity-check against the pure-JAX reference of the PyTorch semantics.
    ref_scores, (ref_h, ref_c) = char_decoder_ref(input_ids, params, dec_hidden)
    assert scores.shape == (T, B, V_CHAR)
    assert h_t.shape == (1, B, HIDDEN) and c_t.shape == (1, B, HIDDEN)
    assert jnp.allclose(scores, ref_scores, atol=1e-4, rtol=1e-4)
    assert jnp.allclose(h_t, ref_h, atol=1e-4, rtol=1e-4)
    assert jnp.allclose(c_t, ref_c, atol=1e-4, rtol=1e-4)

    print("KERNEL_OK")
</pallas_src>

<mosaic_0001>
module attributes {stable_mosaic.version = 11 : i64} {
  func.func @_char_decoder_kernel(%arg0: i32, %arg1: memref<64x50xf32, #tpu.memory_space<vmem>>, %arg2: memref<50x128xf32, #tpu.memory_space<vmem>>, %arg3: memref<32x128xf32, #tpu.memory_space<vmem>>, %arg4: memref<1x128xf32, #tpu.memory_space<vmem>>, %arg5: memref<32x128xf32, #tpu.memory_space<vmem>>, %arg6: memref<1x128xf32, #tpu.memory_space<vmem>>, %arg7: memref<8x32xf32, #tpu.memory_space<vmem>>, %arg8: memref<8x32xf32, #tpu.memory_space<vmem>>, %arg9: memref<64x128xf32, #tpu.memory_space<vmem>>, %arg10: memref<8x32xf32, #tpu.memory_space<vmem>>, %arg11: memref<8x32xf32, #tpu.memory_space<vmem>>, %arg12: memref<64x128xf32, #tpu.memory_space<vmem>>, %arg13: memref<64x32xf32, #tpu.memory_space<vmem>>) attributes {dimension_semantics = [#tpu.dimension_semantics<arbitrary>], iteration_bounds = array<i64: 1>, scalar_prefetch = 0 : i64, scratch_operands = 2 : i64, tpu.core_type = #tpu.core_type<tc>, window_params = [{pipeline_mode = #tpu.pipeline_mode<synchronous>, transform_indices = @transform_0, window_bounds = array<i64: 64, 50>}, {pipeline_mode = #tpu.pipeline_mode<synchronous>, transform_indices = @transform_1, window_bounds = array<i64: 50, 128>}, {pipeline_mode = #tpu.pipeline_mode<synchronous>, transform_indices = @transform_2, window_bounds = array<i64: 32, 128>}, {pipeline_mode = #tpu.pipeline_mode<synchronous>, transform_indices = @transform_3, window_bounds = array<i64: 1, 128>}, {pipeline_mode = #tpu.pipeline_mode<synchronous>, transform_indices = @transform_4, window_bounds = array<i64: 32, 128>}, {pipeline_mode = #tpu.pipeline_mode<synchronous>, transform_indices = @transform_5, window_bounds = array<i64: 1, 128>}, {pipeline_mode = #tpu.pipeline_mode<synchronous>, transform_indices = @transform_6, window_bounds = array<i64: 8, 32>}, {pipeline_mode = #tpu.pipeline_mode<synchronous>, transform_indices = @transform_7, window_bounds = array<i64: 8, 32>}, {pipeline_mode = #tpu.pipeline_mode<synchronous>, transform_indices = @transform_8, window_bounds = array<i64: 64, 128>}, {pipeline_mode = #tpu.pipeline_mode<synchronous>, transform_indices = @transform_9, window_bounds = array<i64: 8, 32>}, {pipeline_mode = #tpu.pipeline_mode<synchronous>, transform_indices = @transform_10, window_bounds = array<i64: 8, 32>}]} {
    %c0 = arith.constant 0 : index
    %c0_0 = arith.constant 0 : index
    %0 = vector.load %arg1[%c0, %c0_0] : memref<64x50xf32, #tpu.memory_space<vmem>>, vector<64x50xf32>
    %c0_1 = arith.constant 0 : index
    %c0_2 = arith.constant 0 : index
    %1 = vector.load %arg2[%c0_1, %c0_2] : memref<50x128xf32, #tpu.memory_space<vmem>>, vector<50x128xf32>
    %cst = arith.constant dense<0.000000e+00> : vector<64x128xf32>
    %2 = tpu.matmul %0, %1, %cst {dimension_numbers = #tpu.dot_dimension_numbers<[1], [0], [0], [1], [0, 0, 1, 1], [], []>} : vector<64x50xf32>, vector<50x128xf32>, vector<64x128xf32> -> vector<64x128xf32>
    %c0_3 = arith.constant 0 : index
    %c0_4 = arith.constant 0 : index
    %3 = vector.load %arg4[%c0_3, %c0_4] : memref<1x128xf32, #tpu.memory_space<vmem>>, vector<1x128xf32>
    %4 = vector.broadcast %3 : vector<1x128xf32> to vector<64x128xf32>
    %5 = arith.addf %2, %4 : vector<64x128xf32>
    %c0_5 = arith.constant 0 : index
    %c0_6 = arith.constant 0 : index
    %6 = vector.load %arg12[%c0_5, %c0_6] : memref<64x128xf32, #tpu.memory_space<vmem>>, vector<64x128xf32>
    tpu.vector_store %arg12[%c0_5, %c0_6], %5 {strides = array<i32>} : memref<64x128xf32, #tpu.memory_space<vmem>>, vector<64x128xf32>,
    %c0_7 = arith.constant 0 : index
    %c0_8 = arith.constant 0 : index
    %7 = vector.load %arg3[%c0_7, %c0_8] : memref<32x128xf32, #tpu.memory_space<vmem>>, vector<32x128xf32>
    %c0_9 = arith.constant 0 : index
    %c0_10 = arith.constant 0 : index
    %8 = vector.load %arg7[%c0_9, %c0_10] : memref<8x32xf32, #tpu.memory_space<vmem>>, vector<8x32xf32>
    %c0_11 = arith.constant 0 : index
    %c0_12 = arith.constant 0 : index
    %9 = vector.load %arg8[%c0_11, %c0_12] : memref<8x32xf32, #tpu.memory_space<vmem>>, vector<8x32xf32>
    %c0_i32 = arith.constant 0 : i32
    %c8_i32 = arith.constant 8 : i32
    %10 = arith.muli %c0_i32, %c8_i32 : i32
    %11 = tpu.assume_multiple %10, 8 : i32
    %12 = arith.index_cast %11 : i32 to index
    %c0_13 = arith.constant 0 : index
    %13 = vector.load %arg12[%12, %c0_13] : memref<64x128xf32, #tpu.memory_space<vmem>>, vector<8x128xf32>
    %cst_14 = arith.constant dense<0.000000e+00> : vector<8x128xf32>
    %14 = tpu.matmul %8, %7, %cst_14 {dimension_numbers = #tpu.dot_dimension_numbers<[1], [0], [0], [1], [0, 0, 1, 1], [], []>} : vector<8x32xf32>, vector<32x128xf32>, vector<8x128xf32> -> vector<8x128xf32>
    %15 = arith.addf %13, %14 : vector<8x128xf32>
    %16 = vector.extract_strided_slice %15 {offsets = [0, 0], sizes = [8, 32], strides = [1, 1]} : vector<8x128xf32> to vector<8x32xf32>
    %17 = arith.negf %16 : vector<8x32xf32>
    %18 = math.exp %17 : vector<8x32xf32>
    %cst_15 = arith.constant 1.000000e+00 : f32
    %19 = vector.broadcast %cst_15 : f32 to vector<8x32xf32>
    %20 = arith.addf %19, %18 : vector<8x32xf32>
    %21 = arith.divf %19, %20 : vector<8x32xf32>
    %22 = vector.extract_strided_slice %15 {offsets = [0, 32], sizes = [8, 32], strides = [1, 1]} : vector<8x128xf32> to vector<8x32xf32>
    %23 = arith.negf %22 : vector<8x32xf32>
    %24 = math.exp %23 : vector<8x32xf32>
    %cst_16 = arith.constant 1.000000e+00 : f32
    %25 = vector.broadcast %cst_16 : f32 to vector<8x32xf32>
    %26 = arith.addf %25, %24 : vector<8x32xf32>
    %27 = arith.divf %25, %26 : vector<8x32xf32>
    %28 = vector.extract_strided_slice %15 {offsets = [0, 64], sizes = [8, 32], strides = [1, 1]} : vector<8x128xf32> to vector<8x32xf32>
    %29 = math.tanh %28 : vector<8x32xf32>
    %30 = vector.extract_strided_slice %15 {offsets = [0, 96], sizes = [8, 32], strides = [1, 1]} : vector<8x128xf32> to vector<8x32xf32>
    %31 = arith.negf %30 : vector<8x32xf32>
    %32 = math.exp %31 : vector<8x32xf32>
    %cst_17 = arith.constant 1.000000e+00 : f32
    %33 = vector.broadcast %cst_17 : f32 to vector<8x32xf32>
    %34 = arith.addf %33, %32 : vector<8x32xf32>
    %35 = arith.divf %33, %34 : vector<8x32xf32>
    %36 = arith.mulf %27, %9 : vector<8x32xf32>
    %37 = arith.mulf %21, %29 : vector<8x32xf32>
    %38 = arith.addf %36, %37 : vector<8x32xf32>
    %39 = math.tanh %38 : vector<8x32xf32>
    %40 = arith.mulf %35, %39 : vector<8x32xf32>
    %41 = arith.index_cast %11 : i32 to index
    %c0_18 = arith.constant 0 : index
    %42 = vector.load %arg13[%41, %c0_18] : memref<64x32xf32, #tpu.memory_space<vmem>>, vector<8x32xf32>
    tpu.vector_store %arg13[%41, %c0_18], %40 {strides = array<i32>} : memref<64x32xf32, #tpu.memory_space<vmem>>, vector<8x32xf32>,
    %c1_i32 = arith.constant 1 : i32
    %c8_i32_19 = arith.constant 8 : i32
    %43 = arith.muli %c1_i32, %c8_i32_19 : i32
    %44 = tpu.assume_multiple %43, 8 : i32
    %45 = arith.index_cast %44 : i32 to index
    %c0_20 = arith.constant 0 : index
    %46 = vector.load %arg12[%45, %c0_20] : memref<64x128xf32, #tpu.memory_space<vmem>>, vector<8x128xf32>
    %cst_21 = arith.constant dense<0.000000e+00> : vector<8x128xf32>
    %47 = tpu.matmul %40, %7, %cst_21 {dimension_numbers = #tpu.dot_dimension_numbers<[1], [0], [0], [1], [0, 0, 1, 1], [], []>} : vector<8x32xf32>, vector<32x128xf32>, vector<8x128xf32> -> vector<8x128xf32>
    %48 = arith.addf %46, %47 : vector<8x128xf32>
    %49 = vector.extract_strided_slice %48 {offsets = [0, 0], sizes = [8, 32], strides = [1, 1]} : vector<8x128xf32> to vector<8x32xf32>
    %50 = arith.negf %49 : vector<8x32xf32>
    %51 = math.exp %50 : vector<8x32xf32>
    %cst_22 = arith.constant 1.000000e+00 : f32
    %52 = vector.broadcast %cst_22 : f32 to vector<8x32xf32>
    %53 = arith.addf %52, %51 : vector<8x32xf32>
    %54 = arith.divf %52, %53 : vector<8x32xf32>
    %55 = vector.extract_strided_slice %48 {offsets = [0, 32], sizes = [8, 32], strides = [1, 1]} : vector<8x128xf32> to vector<8x32xf32>
    %56 = arith.negf %55 : vector<8x32xf32>
    %57 = math.exp %56 : vector<8x32xf32>
    %cst_23 = arith.constant 1.000000e+00 : f32
    %58 = vector.broadcast %cst_23 : f32 to vector<8x32xf32>
    %59 = arith.addf %58, %57 : vector<8x32xf32>
    %60 = arith.divf %58, %59 : vector<8x32xf32>
    %61 = vector.extract_strided_slice %48 {offsets = [0, 64], sizes = [8, 32], strides = [1, 1]} : vector<8x128xf32> to vector<8x32xf32>
    %62 = math.tanh %61 : vector<8x32xf32>
    %63 = vector.extract_strided_slice %48 {offsets = [0, 96], sizes = [8, 32], strides = [1, 1]} : vector<8x128xf32> to vector<8x32xf32>
    %64 = arith.negf %63 : vector<8x32xf32>
    %65 = math.exp %64 : vector<8x32xf32>
    %cst_24 = arith.constant 1.000000e+00 : f32
    %66 = vector.broadcast %cst_24 : f32 to vector<8x32xf32>
    %67 = arith.addf %66, %65 : vector<8x32xf32>
    %68 = arith.divf %66, %67 : vector<8x32xf32>
    %69 = arith.mulf %60, %38 : vector<8x32xf32>
    %70 = arith.mulf %54, %62 : vector<8x32xf32>
    %71 = arith.addf %69, %70 : vector<8x32xf32>
    %72 = math.tanh %71 : vector<8x32xf32>
    %73 = arith.mulf %68, %72 : vector<8x32xf32>
    %74 = arith.index_cast %44 : i32 to index
    %c0_25 = arith.constant 0 : index
    %75 = vector.load %arg13[%74, %c0_25] : memref<64x32xf32, #tpu.memory_space<vmem>>, vector<8x32xf32>
    tpu.vector_store %arg13[%74, %c0_25], %73 {strides = array<i32>} : memref<64x32xf32, #tpu.memory_space<vmem>>, vector<8x32xf32>,
    %c2_i32 = arith.constant 2 : i32
    %c8_i32_26 = arith.constant 8 : i32
    %76 = arith.muli %c2_i32, %c8_i32_26 : i32
    %77 = tpu.assume_multiple %76, 8 : i32
    %78 = arith.index_cast %77 : i32 to index
    %c0_27 = arith.constant 0 : index
    %79 = vector.load %arg12[%78, %c0_27] : memref<64x128xf32, #tpu.memory_space<vmem>>, vector<8x128xf32>
    %cst_28 = arith.constant dense<0.000000e+00> : vector<8x128xf32>
    %80 = tpu.matmul %73, %7, %cst_28 {dimension_numbers = #tpu.dot_dimension_numbers<[1], [0], [0], [1], [0, 0, 1, 1], [], []>} : vector<8x32xf32>, vector<32x128xf32>, vector<8x128xf32> -> vector<8x128xf32>
    %81 = arith.addf %79, %80 : vector<8x128xf32>
    %82 = vector.extract_strided_slice %81 {offsets = [0, 0], sizes = [8, 32], strides = [1, 1]} : vector<8x128xf32> to vector<8x32xf32>
    %83 = arith.negf %82 : vector<8x32xf32>
    %84 = math.exp %83 : vector<8x32xf32>
    %cst_29 = arith.constant 1.000000e+00 : f32
    %85 = vector.broadcast %cst_29 : f32 to vector<8x32xf32>
    %86 = arith.addf %85, %84 : vector<8x32xf32>
    %87 = arith.divf %85, %86 : vector<8x32xf32>
    %88 = vector.extract_strided_slice %81 {offsets = [0, 32], sizes = [8, 32], strides = [1, 1]} : vector<8x128xf32> to vector<8x32xf32>
    %89 = arith.negf %88 : vector<8x32xf32>
    %90 = math.exp %89 : vector<8x32xf32>
    %cst_30 = arith.constant 1.000000e+00 : f32
    %91 = vector.broadcast %cst_30 : f32 to vector<8x32xf32>
    %92 = arith.addf %91, %90 : vector<8x32xf32>
    %93 = arith.divf %91, %92 : vector<8x32xf32>
    %94 = vector.extract_strided_slice %81 {offsets = [0, 64], sizes = [8, 32], strides = [1, 1]} : vector<8x128xf32> to vector<8x32xf32>
    %95 = math.tanh %94 : vector<8x32xf32>
    %96 = vector.extract_strided_slice %81 {offsets = [0, 96], sizes = [8, 32], strides = [1, 1]} : vector<8x128xf32> to vector<8x32xf32>
    %97 = arith.negf %96 : vector<8x32xf32>
    %98 = math.exp %97 : vector<8x32xf32>
    %cst_31 = arith.constant 1.000000e+00 : f32
    %99 = vector.broadcast %cst_31 : f32 to vector<8x32xf32>
    %100 = arith.addf %99, %98 : vector<8x32xf32>
    %101 = arith.divf %99, %100 : vector<8x32xf32>
    %102 = arith.mulf %93, %71 : vector<8x32xf32>
    %103 = arith.mulf %87, %95 : vector<8x32xf32>
    %104 = arith.addf %102, %103 : vector<8x32xf32>
    %105 = math.tanh %104 : vector<8x32xf32>
    %106 = arith.mulf %101, %105 : vector<8x32xf32>
    %107 = arith.index_cast %77 : i32 to index
    %c0_32 = arith.constant 0 : index
    %108 = vector.load %arg13[%107, %c0_32] : memref<64x32xf32, #tpu.memory_space<vmem>>, vector<8x32xf32>
    tpu.vector_store %arg13[%107, %c0_32], %106 {strides = array<i32>} : memref<64x32xf32, #tpu.memory_space<vmem>>, vector<8x32xf32>,
    %c3_i32 = arith.constant 3 : i32
    %c8_i32_33 = arith.constant 8 : i32
    %109 = arith.muli %c3_i32, %c8_i32_33 : i32
    %110 = tpu.assume_multiple %109, 8 : i32
    %111 = arith.index_cast %110 : i32 to index
    %c0_34 = arith.constant 0 : index
    %112 = vector.load %arg12[%111, %c0_34] : memref<64x128xf32, #tpu.memory_space<vmem>>, vector<8x128xf32>
    %cst_35 = arith.constant dense<0.000000e+00> : vector<8x128xf32>
    %113 = tpu.matmul %106, %7, %cst_35 {dimension_numbers = #tpu.dot_dimension_numbers<[1], [0], [0], [1], [0, 0, 1, 1], [], []>} : vector<8x32xf32>, vector<32x128xf32>, vector<8x128xf32> -> vector<8x128xf32>
    %114 = arith.addf %112, %113 : vector<8x128xf32>
    %115 = vector.extract_strided_slice %114 {offsets = [0, 0], sizes = [8, 32], strides = [1, 1]} : vector<8x128xf32> to vector<8x32xf32>
    %116 = arith.negf %115 : vector<8x32xf32>
    %117 = math.exp %116 : vector<8x32xf32>
    %cst_36 = arith.constant 1.000000e+00 : f32
    %118 = vector.broadcast %cst_36 : f32 to vector<8x32xf32>
    %119 = arith.addf %118, %117 : vector<8x32xf32>
    %120 = arith.divf %118, %119 : vector<8x32xf32>
    %121 = vector.extract_strided_slice %114 {offsets = [0, 32], sizes = [8, 32], strides = [1, 1]} : vector<8x128xf32> to vector<8x32xf32>
    %122 = arith.negf %121 : vector<8x32xf32>
    %123 = math.exp %122 : vector<8x32xf32>
    %cst_37 = arith.constant 1.000000e+00 : f32
    %124 = vector.broadcast %cst_37 : f32 to vector<8x32xf32>
    %125 = arith.addf %124, %123 : vector<8x32xf32>
    %126 = arith.divf %124, %125 : vector<8x32xf32>
    %127 = vector.extract_strided_slice %114 {offsets = [0, 64], sizes = [8, 32], strides = [1, 1]} : vector<8x128xf32> to vector<8x32xf32>
    %128 = math.tanh %127 : vector<8x32xf32>
    %129 = vector.extract_strided_slice %114 {offsets = [0, 96], sizes = [8, 32], strides = [1, 1]} : vector<8x128xf32> to vector<8x32xf32>
    %130 = arith.negf %129 : vector<8x32xf32>
    %131 = math.exp %130 : vector<8x32xf32>
    %cst_38 = arith.constant 1.000000e+00 : f32
    %132 = vector.broadcast %cst_38 : f32 to vector<8x32xf32>
    %133 = arith.addf %132, %131 : vector<8x32xf32>
    %134 = arith.divf %132, %133 : vector<8x32xf32>
    %135 = arith.mulf %126, %104 : vector<8x32xf32>
    %136 = arith.mulf %120, %128 : vector<8x32xf32>
    %137 = arith.addf %135, %136 : vector<8x32xf32>
    %138 = math.tanh %137 : vector<8x32xf32>
    %139 = arith.mulf %134, %138 : vector<8x32xf32>
    %140 = arith.index_cast %110 : i32 to index
    %c0_39 = arith.constant 0 : index
    %141 = vector.load %arg13[%140, %c0_39] : memref<64x32xf32, #tpu.memory_space<vmem>>, vector<8x32xf32>
    tpu.vector_store %arg13[%140, %c0_39], %139 {strides = array<i32>} : memref<64x32xf32, #tpu.memory_space<vmem>>, vector<8x32xf32>,
    %c4_i32 = arith.constant 4 : i32
    %c8_i32_40 = arith.constant 8 : i32
    %142 = arith.muli %c4_i32, %c8_i32_40 : i32
    %143 = tpu.assume_multiple %142, 8 : i32
    %144 = arith.index_cast %143 : i32 to index
    %c0_41 = arith.constant 0 : index
    %145 = vector.load %arg12[%144, %c0_41] : memref<64x128xf32, #tpu.memory_space<vmem>>, vector<8x128xf32>
    %cst_42 = arith.constant dense<0.000000e+00> : vector<8x128xf32>
    %146 = tpu.matmul %139, %7, %cst_42 {dimension_numbers = #tpu.dot_dimension_numbers<[1], [0], [0], [1], [0, 0, 1, 1], [], []>} : vector<8x32xf32>, vector<32x128xf32>, vector<8x128xf32> -> vector<8x128xf32>
    %147 = arith.addf %145, %146 : vector<8x128xf32>
    %148 = vector.extract_strided_slice %147 {offsets = [0, 0], sizes = [8, 32], strides = [1, 1]} : vector<8x128xf32> to vector<8x32xf32>
    %149 = arith.negf %148 : vector<8x32xf32>
    %150 = math.exp %149 : vector<8x32xf32>
    %cst_43 = arith.constant 1.000000e+00 : f32
    %151 = vector.broadcast %cst_43 : f32 to vector<8x32xf32>
    %152 = arith.addf %151, %150 : vector<8x32xf32>
    %153 = arith.divf %151, %152 : vector<8x32xf32>
    %154 = vector.extract_strided_slice %147 {offsets = [0, 32], sizes = [8, 32], strides = [1, 1]} : vector<8x128xf32> to vector<8x32xf32>
    %155 = arith.negf %154 : vector<8x32xf32>
    %156 = math.exp %155 : vector<8x32xf32>
    %cst_44 = arith.constant 1.000000e+00 : f32
    %157 = vector.broadcast %cst_44 : f32 to vector<8x32xf32>
    %158 = arith.addf %157, %156 : vector<8x32xf32>
    %159 = arith.divf %157, %158 : vector<8x32xf32>
    %160 = vector.extract_strided_slice %147 {offsets = [0, 64], sizes = [8, 32], strides = [1, 1]} : vector<8x128xf32> to vector<8x32xf32>
    %161 = math.tanh %160 : vector<8x32xf32>
    %162 = vector.extract_strided_slice %147 {offsets = [0, 96], sizes = [8, 32], strides = [1, 1]} : vector<8x128xf32> to vector<8x32xf32>
    %163 = arith.negf %162 : vector<8x32xf32>
    %164 = math.exp %163 : vector<8x32xf32>
    %cst_45 = arith.constant 1.000000e+00 : f32
    %165 = vector.broadcast %cst_45 : f32 to vector<8x32xf32>
    %166 = arith.addf %165, %164 : vector<8x32xf32>
    %167 = arith.divf %165, %166 : vector<8x32xf32>
    %168 = arith.mulf %159, %137 : vector<8x32xf32>
    %169 = arith.mulf %153, %161 : vector<8x32xf32>
    %170 = arith.addf %168, %169 : vector<8x32xf32>
    %171 = math.tanh %170 : vector<8x32xf32>
    %172 = arith.mulf %167, %171 : vector<8x32xf32>
    %173 = arith.index_cast %143 : i32 to index
    %c0_46 = arith.constant 0 : index
    %174 = vector.load %arg13[%173, %c0_46] : memref<64x32xf32, #tpu.memory_space<vmem>>, vector<8x32xf32>
    tpu.vector_store %arg13[%173, %c0_46], %172 {strides = array<i32>} : memref<64x32xf32, #tpu.memory_space<vmem>>, vector<8x32xf32>,
    %c5_i32 = arith.constant 5 : i32
    %c8_i32_47 = arith.constant 8 : i32
    %175 = arith.muli %c5_i32, %c8_i32_47 : i32
    %176 = tpu.assume_multiple %175, 8 : i32
    %177 = arith.index_cast %176 : i32 to index
    %c0_48 = arith.constant 0 : index
    %178 = vector.load %arg12[%177, %c0_48] : memref<64x128xf32, #tpu.memory_space<vmem>>, vector<8x128xf32>
    %cst_49 = arith.constant dense<0.000000e+00> : vector<8x128xf32>
    %179 = tpu.matmul %172, %7, %cst_49 {dimension_numbers = #tpu.dot_dimension_numbers<[1], [0], [0], [1], [0, 0, 1, 1], [], []>} : vector<8x32xf32>, vector<32x128xf32>, vector<8x128xf32> -> vector<8x128xf32>
    %180 = arith.addf %178, %179 : vector<8x128xf32>
    %181 = vector.extract_strided_slice %180 {offsets = [0, 0], sizes = [8, 32], strides = [1, 1]} : vector<8x128xf32> to vector<8x32xf32>
    %182 = arith.negf %181 : vector<8x32xf32>
    %183 = math.exp %182 : vector<8x32xf32>
    %cst_50 = arith.constant 1.000000e+00 : f32
    %184 = vector.broadcast %cst_50 : f32 to vector<8x32xf32>
    %185 = arith.addf %184, %183 : vector<8x32xf32>
    %186 = arith.divf %184, %185 : vector<8x32xf32>
    %187 = vector.extract_strided_slice %180 {offsets = [0, 32], sizes = [8, 32], strides = [1, 1]} : vector<8x128xf32> to vector<8x32xf32>
    %188 = arith.negf %187 : vector<8x32xf32>
    %189 = math.exp %188 : vector<8x32xf32>
    %cst_51 = arith.constant 1.000000e+00 : f32
    %190 = vector.broadcast %cst_51 : f32 to vector<8x32xf32>
    %191 = arith.addf %190, %189 : vector<8x32xf32>
    %192 = arith.divf %190, %191 : vector<8x32xf32>
    %193 = vector.extract_strided_slice %180 {offsets = [0, 64], sizes = [8, 32], strides = [1, 1]} : vector<8x128xf32> to vector<8x32xf32>
    %194 = math.tanh %193 : vector<8x32xf32>
    %195 = vector.extract_strided_slice %180 {offsets = [0, 96], sizes = [8, 32], strides = [1, 1]} : vector<8x128xf32> to vector<8x32xf32>
    %196 = arith.negf %195 : vector<8x32xf32>
    %197 = math.exp %196 : vector<8x32xf32>
    %cst_52 = arith.constant 1.000000e+00 : f32
    %198 = vector.broadcast %cst_52 : f32 to vector<8x32xf32>
    %199 = arith.addf %198, %197 : vector<8x32xf32>
    %200 = arith.divf %198, %199 : vector<8x32xf32>
    %201 = arith.mulf %192, %170 : vector<8x32xf32>
    %202 = arith.mulf %186, %194 : vector<8x32xf32>
    %203 = arith.addf %201, %202 : vector<8x32xf32>
    %204 = math.tanh %203 : vector<8x32xf32>
    %205 = arith.mulf %200, %204 : vector<8x32xf32>
    %206 = arith.index_cast %176 : i32 to index
    %c0_53 = arith.constant 0 : index
    %207 = vector.load %arg13[%206, %c0_53] : memref<64x32xf32, #tpu.memory_space<vmem>>, vector<8x32xf32>
    tpu.vector_store %arg13[%206, %c0_53], %205 {strides = array<i32>} : memref<64x32xf32, #tpu.memory_space<vmem>>, vector<8x32xf32>,
    %c6_i32 = arith.constant 6 : i32
    %c8_i32_54 = arith.constant 8 : i32
    %208 = arith.muli %c6_i32, %c8_i32_54 : i32
    %209 = tpu.assume_multiple %208, 8 : i32
    %210 = arith.index_cast %209 : i32 to index
    %c0_55 = arith.constant 0 : index
    %211 = vector.load %arg12[%210, %c0_55] : memref<64x128xf32, #tpu.memory_space<vmem>>, vector<8x128xf32>
    %cst_56 = arith.constant dense<0.000000e+00> : vector<8x128xf32>
    %212 = tpu.matmul %205, %7, %cst_56 {dimension_numbers = #tpu.dot_dimension_numbers<[1], [0], [0], [1], [0, 0, 1, 1], [], []>} : vector<8x32xf32>, vector<32x128xf32>, vector<8x128xf32> -> vector<8x128xf32>
    %213 = arith.addf %211, %212 : vector<8x128xf32>
    %214 = vector.extract_strided_slice %213 {offsets = [0, 0], sizes = [8, 32], strides = [1, 1]} : vector<8x128xf32> to vector<8x32xf32>
    %215 = arith.negf %214 : vector<8x32xf32>
    %216 = math.exp %215 : vector<8x32xf32>
    %cst_57 = arith.constant 1.000000e+00 : f32
    %217 = vector.broadcast %cst_57 : f32 to vector<8x32xf32>
    %218 = arith.addf %217, %216 : vector<8x32xf32>
    %219 = arith.divf %217, %218 : vector<8x32xf32>
    %220 = vector.extract_strided_slice %213 {offsets = [0, 32], sizes = [8, 32], strides = [1, 1]} : vector<8x128xf32> to vector<8x32xf32>
    %221 = arith.negf %220 : vector<8x32xf32>
    %222 = math.exp %221 : vector<8x32xf32>
    %cst_58 = arith.constant 1.000000e+00 : f32
    %223 = vector.broadcast %cst_58 : f32 to vector<8x32xf32>
    %224 = arith.addf %223, %222 : vector<8x32xf32>
    %225 = arith.divf %223, %224 : vector<8x32xf32>
    %226 = vector.extract_strided_slice %213 {offsets = [0, 64], sizes = [8, 32], strides = [1, 1]} : vector<8x128xf32> to vector<8x32xf32>
    %227 = math.tanh %226 : vector<8x32xf32>
    %228 = vector.extract_strided_slice %213 {offsets = [0, 96], sizes = [8, 32], strides = [1, 1]} : vector<8x128xf32> to vector<8x32xf32>
    %229 = arith.negf %228 : vector<8x32xf32>
    %230 = math.exp %229 : vector<8x32xf32>
    %cst_59 = arith.constant 1.000000e+00 : f32
    %231 = vector.broadcast %cst_59 : f32 to vector<8x32xf32>
    %232 = arith.addf %231, %230 : vector<8x32xf32>
    %233 = arith.divf %231, %232 : vector<8x32xf32>
    %234 = arith.mulf %225, %203 : vector<8x32xf32>
    %235 = arith.mulf %219, %227 : vector<8x32xf32>
    %236 = arith.addf %234, %235 : vector<8x32xf32>
    %237 = math.tanh %236 : vector<8x32xf32>
    %238 = arith.mulf %233, %237 : vector<8x32xf32>
    %239 = arith.index_cast %209 : i32 to index
    %c0_60 = arith.constant 0 : index
    %240 = vector.load %arg13[%239, %c0_60] : memref<64x32xf32, #tpu.memory_space<vmem>>, vector<8x32xf32>
    tpu.vector_store %arg13[%239, %c0_60], %238 {strides = array<i32>} : memref<64x32xf32, #tpu.memory_space<vmem>>, vector<8x32xf32>,
    %c7_i32 = arith.constant 7 : i32
    %c8_i32_61 = arith.constant 8 : i32
    %241 = arith.muli %c7_i32, %c8_i32_61 : i32
    %242 = tpu.assume_multiple %241, 8 : i32
    %243 = arith.index_cast %242 : i32 to index
    %c0_62 = arith.constant 0 : index
    %244 = vector.load %arg12[%243, %c0_62] : memref<64x128xf32, #tpu.memory_space<vmem>>, vector<8x128xf32>
    %cst_63 = arith.constant dense<0.000000e+00> : vector<8x128xf32>
    %245 = tpu.matmul %238, %7, %cst_63 {dimension_numbers = #tpu.dot_dimension_numbers<[1], [0], [0], [1], [0, 0, 1, 1], [], []>} : vector<8x32xf32>, vector<32x128xf32>, vector<8x128xf32> -> vector<8x128xf32>
    %246 = arith.addf %244, %245 : vector<8x128xf32>
    %247 = vector.extract_strided_slice %246 {offsets = [0, 0], sizes = [8, 32], strides = [1, 1]} : vector<8x128xf32> to vector<8x32xf32>
    %248 = arith.negf %247 : vector<8x32xf32>
    %249 = math.exp %248 : vector<8x32xf32>
    %cst_64 = arith.constant 1.000000e+00 : f32
    %250 = vector.broadcast %cst_64 : f32 to vector<8x32xf32>
    %251 = arith.addf %250, %249 : vector<8x32xf32>
    %252 = arith.divf %250, %251 : vector<8x32xf32>
    %253 = vector.extract_strided_slice %246 {offsets = [0, 32], sizes = [8, 32], strides = [1, 1]} : vector<8x128xf32> to vector<8x32xf32>
    %254 = arith.negf %253 : vector<8x32xf32>
    %255 = math.exp %254 : vector<8x32xf32>
    %cst_65 = arith.constant 1.000000e+00 : f32
    %256 = vector.broadcast %cst_65 : f32 to vector<8x32xf32>
    %257 = arith.addf %256, %255 : vector<8x32xf32>
    %258 = arith.divf %256, %257 : vector<8x32xf32>
    %259 = vector.extract_strided_slice %246 {offsets = [0, 64], sizes = [8, 32], strides = [1, 1]} : vector<8x128xf32> to vector<8x32xf32>
    %260 = math.tanh %259 : vector<8x32xf32>
    %261 = vector.extract_strided_slice %246 {offsets = [0, 96], sizes = [8, 32], strides = [1, 1]} : vector<8x128xf32> to vector<8x32xf32>
    %262 = arith.negf %261 : vector<8x32xf32>
    %263 = math.exp %262 : vector<8x32xf32>
    %cst_66 = arith.constant 1.000000e+00 : f32
    %264 = vector.broadcast %cst_66 : f32 to vector<8x32xf32>
    %265 = arith.addf %264, %263 : vector<8x32xf32>
    %266 = arith.divf %264, %265 : vector<8x32xf32>
    %267 = arith.mulf %258, %236 : vector<8x32xf32>
    %268 = arith.mulf %252, %260 : vector<8x32xf32>
    %269 = arith.addf %267, %268 : vector<8x32xf32>
    %270 = math.tanh %269 : vector<8x32xf32>
    %271 = arith.mulf %266, %270 : vector<8x32xf32>
    %272 = arith.index_cast %242 : i32 to index
    %c0_67 = arith.constant 0 : index
    %273 = vector.load %arg13[%272, %c0_67] : memref<64x32xf32, #tpu.memory_space<vmem>>, vector<8x32xf32>
    tpu.vector_store %arg13[%272, %c0_67], %271 {strides = array<i32>} : memref<64x32xf32, #tpu.memory_space<vmem>>, vector<8x32xf32>,
    %c8_i32_68 = arith.constant 8 : i32
    %c0_69 = arith.constant 0 : index
    %c0_70 = arith.constant 0 : index
    %274 = vector.load %arg10[%c0_69, %c0_70] : memref<8x32xf32, #tpu.memory_space<vmem>>, vector<8x32xf32>
    tpu.vector_store %arg10[%c0_69, %c0_70], %271 {strides = array<i32>} : memref<8x32xf32, #tpu.memory_space<vmem>>, vector<8x32xf32>,
    %c0_71 = arith.constant 0 : index
    %c0_72 = arith.constant 0 : index
    %275 = vector.load %arg11[%c0_71, %c0_72] : memref<8x32xf32, #tpu.memory_space<vmem>>, vector<8x32xf32>
    tpu.vector_store %arg11[%c0_71, %c0_72], %269 {strides = array<i32>} : memref<8x32xf32, #tpu.memory_space<vmem>>, vector<8x32xf32>,
    %c0_73 = arith.constant 0 : index
    %c0_74 = arith.constant 0 : index
    %276 = vector.load %arg13[%c0_73, %c0_74] : memref<64x32xf32, #tpu.memory_space<vmem>>, vector<64x32xf32>
    %c0_75 = arith.constant 0 : index
    %c0_76 = arith.constant 0 : index
    %277 = vector.load %arg5[%c0_75, %c0_76] : memref<32x128xf32, #tpu.memory_space<vmem>>, vector<32x128xf32>
    %cst_77 = arith.constant dense<0.000000e+00> : vector<64x128xf32>
    %278 = tpu.matmul %276, %277, %cst_77 {dimension_numbers = #tpu.dot_dimension_numbers<[1], [0], [0], [1], [0, 0, 1, 1], [], []>} : vector<64x32xf32>, vector<32x128xf32>, vector<64x128xf32> -> vector<64x128xf32>
    %c0_78 = arith.constant 0 : index
    %c0_79 = arith.constant 0 : index
    %279 = vector.load %arg6[%c0_78, %c0_79] : memref<1x128xf32, #tpu.memory_space<vmem>>, vector<1x128xf32>
    %280 = vector.broadcast %279 : vector<1x128xf32> to vector<64x128xf32>
    %281 = arith.addf %278, %280 : vector<64x128xf32>
    %c0_80 = arith.constant 0 : index
    %c0_81 = arith.constant 0 : index
    %282 = vector.load %arg9[%c0_80, %c0_81] : memref<64x128xf32, #tpu.memory_space<vmem>>, vector<64x128xf32>
    tpu.vector_store %arg9[%c0_80, %c0_81], %281 {strides = array<i32>} : memref<64x128xf32, #tpu.memory_space<vmem>>, vector<64x128xf32>,
    return
  }
  func.func @transform_0(%arg0: i32) -> (i32, i32) {
    %c0_i32 = arith.constant 0 : i32
    %c0_i32_0 = arith.constant 0 : i32
    %c0_i32_1 = arith.constant 0 : i32
    return %c0_i32, %c0_i32_0 : i32, i32
  }
  func.func @transform_1(%arg0: i32) -> (i32, i32) {
    %c0_i32 = arith.constant 0 : i32
    %c0_i32_0 = arith.constant 0 : i32
    %c0_i32_1 = arith.constant 0 : i32
    return %c0_i32, %c0_i32_0 : i32, i32
  }
  func.func @transform_2(%arg0: i32) -> (i32, i32) {
    %c0_i32 = arith.constant 0 : i32
    %c0_i32_0 = arith.constant 0 : i32
    %c0_i32_1 = arith.constant 0 : i32
    return %c0_i32, %c0_i32_0 : i32, i32
  }
  func.func @transform_3(%arg0: i32) -> (i32, i32) {
    %c0_i32 = arith.constant 0 : i32
    %c0_i32_0 = arith.constant 0 : i32
    %c0_i32_1 = arith.constant 0 : i32
    return %c0_i32, %c0_i32_0 : i32, i32
  }
  func.func @transform_4(%arg0: i32) -> (i32, i32) {
    %c0_i32 = arith.constant 0 : i32
    %c0_i32_0 = arith.constant 0 : i32
    %c0_i32_1 = arith.constant 0 : i32
    return %c0_i32, %c0_i32_0 : i32, i32
  }
  func.func @transform_5(%arg0: i32) -> (i32, i32) {
    %c0_i32 = arith.constant 0 : i32
    %c0_i32_0 = arith.constant 0 : i32
    %c0_i32_1 = arith.constant 0 : i32
    return %c0_i32, %c0_i32_0 : i32, i32
  }
  func.func @transform_6(%arg0: i32) -> (i32, i32) {
    %c0_i32 = arith.constant 0 : i32
    %c0_i32_0 = arith.constant 0 : i32
    %c0_i32_1 = arith.constant 0 : i32
    return %c0_i32, %c0_i32_0 : i32, i32
  }
  func.func @transform_7(%arg0: i32) -> (i32, i32) {
    %c0_i32 = arith.constant 0 : i32
    %c0_i32_0 = arith.constant 0 : i32
    %c0_i32_1 = arith.constant 0 : i32
    return %c0_i32, %c0_i32_0 : i32, i32
  }
  func.func @transform_8(%arg0: i32) -> (i32, i32) {
    %c0_i32 = arith.constant 0 : i32
    %c0_i32_0 = arith.constant 0 : i32
    %c0_i32_1 = arith.constant 0 : i32
    return %c0_i32, %c0_i32_0 : i32, i32
  }
  func.func @transform_9(%arg0: i32) -> (i32, i32) {
    %c0_i32 = arith.constant 0 : i32
    %c0_i32_0 = arith.constant 0 : i32
    %c0_i32_1 = arith.constant 0 : i32
    return %c0_i32, %c0_i32_0 : i32, i32
  }
  func.func @transform_10(%arg0: i32) -> (i32, i32) {
    %c0_i32 = arith.constant 0 : i32
    %c0_i32_0 = arith.constant 0 : i32
    %c0_i32_1 = arith.constant 0 : i32
    return %c0_i32, %c0_i32_0 : i32, i32
  }
}

</mosaic_0001>

<bundles_post_ra>
// kernel: tpu_custom_call.1
= control target key start
LH: loop header
LB: loop body
LE: loop exit
PB: predicated region body
PF: predicated region fallthrough
CT: control target
= control target key end

     0   :  { %16 = vsyncpa [#allocation5], 0  ;;  %vm56_vm0 = vcmask 408576   ;;  %v1702_v5 = vmov 0.0|0.0   ;;  %vm1703_vm1 = vmmov 0   ;;  %v1704_v10 = vmov 0.0   ;;  %s2036_s0 = inlined_call_operand.vmem [shape: f32[64,50], index: 0, kind: input, shape index: {}]   ;;  %s2037_s1 = inlined_call_operand.vmem [shape: f32[50,128], index: 1, kind: input, shape index: {}]   ;;  %s2038_s2 = inlined_call_operand.vmem [shape: f32[32,128], index: 2, kind: input, shape index: {}]   ;;  %s2039_s3 = inlined_call_operand.vmem [shape: f32[1,128], index: 3, kind: input, shape index: {}]   ;;  %s2040_s4 = inlined_call_operand.vmem [shape: f32[32,128], index: 4, kind: input, shape index: {}]   ;;  %s2041_s5 = inlined_call_operand.vmem [shape: f32[1,128], index: 5, kind: input, shape index: {}]   ;;  %s2042_s6 = inlined_call_operand.vmem [shape: f32[8,32], index: 6, kind: input, shape index: {}]   ;;  %s2043_s7 = inlined_call_operand.vmem [shape: f32[8,32], index: 7, kind: input, shape index: {}]   ;;  %s2044_s8 = inlined_call_operand.hbm [shape: f32[64,128], index: 8, kind: output, shape index: {0}]   ;;  %s2045_s9 = inlined_call_operand.hbm [shape: f32[8,32], index: 9, kind: output, shape index: {1}]   ;;  %s2046_s10 = inlined_call_operand.hbm [shape: f32[8,32], index: 10, kind: output, shape index: {2}]  }
   0x1   :  { %v42_v0 = vld [vmem:[%s2037_s1] sm:$0xff]  ;;  %v43_v1 = vld [vmem:[%s2037_s1 + $0x8] sm:$0xff]  ;;  %v44_v2 = vld [vmem:[%s2037_s1 + $0x10] sm:$0xff]  ;;  %1507 = vmatprep.subr.bf16.mxu1 %v1702_v5  ;;  %1400 = vmatprep.mubr.msk.f32.mxu1 %vm1703_vm1, %v1704_v10 }
   0x2   :  { %v1489_v3 = vpack.c.bf16 %v43_v1, %v42_v0  ;;  %v45_v4 = vld [vmem:[%s2037_s1 + $0x18] sm:$0xff]  ;;  %v46_v7 = vld [vmem:[%s2037_s1 + $0x20] sm:$0xff]  ;;  %v47_v8 = vld [vmem:[%s2037_s1 + $0x28] sm:$0xff] }
   0x3   :  { %v1493_v6 = vpack.c.bf16 %v45_v4, %v44_v2  ;;  %v34_v9 = vld [vmem:[%s2036_s0] sm:$0xff]  ;;  %v199_v12 = vld [vmem:[%s2038_s2 + $0x8] sm:$0xff]  ;;  %v1497_v14 = vpack.c.bf16 %v47_v8, %v46_v7  ;;  %v200_v15 = vld [vmem:[%s2038_s2 + $0x10] sm:$0xff] }
   0x4   :  { %1490 = vmatprep.subr.bf16.mxu0 %v1489_v3  ;;  %1369 = vmatprep.mubr.msk.f32.mxu0 %vm56_vm0, %v34_v9  ;;  %v198_v11 = vld [vmem:[%s2038_s2] sm:$0xff]  ;;  %v201_v16 = vld [vmem:[%s2038_s2 + $0x18] sm:$0xff] }
   0x5   :  { %1492 = vmatpush3.bf16.msra.mxu0 %v1489_v3  ;;  %v1799_v13 = vpack.c.bf16 %v199_v12, %v198_v11 }
   0x6   :  { %1494 = vmatprep.subr.bf16.mxu0 %v1493_v6 }
   0x7   :  { %1509 = vmatpush3.bf16.msra.mxu1 %v1799_v13 }
   0x8   :  { %17 = vsyncpa [#allocation7], 0  ;;  %1510 = vmatprep.subr.bf16.mxu1 %v1702_v5  ;;  %v1809_v17 = vpack.c.bf16 %v201_v16, %v200_v15  ;;  %v48_v18 = vld [vmem:[%s2037_s1 + $0x30] sm:$0x3]  ;;  %vm81_vm2 = vcmask 1041408   ;;  %v35_v19 = vld [vmem:[%s2036_s0 + $0x8] sm:$0xff] }
   0x9   :  { %1496 = vmatpush3.bf16.msra.mxu0 %v1493_v6  ;;  %v36_v20 = vld [vmem:[%s2036_s0 + $0x10] sm:$0xff]  ;;  %v37_v21 = vld [vmem:[%s2036_s0 + $0x18] sm:$0xff]  ;;  %v38_v22 = vld [vmem:[%s2036_s0 + $0x20] sm:$0xff]  ;;  %vm205_vm3 = vcmask 261120   ;;  %s1706_s13 = smov 32   ;;  %s1708_s20 = smov [#allocation6]  }
   0xa   :  { %1498 = vmatprep.subr.bf16.mxu0 %v1497_v14  ;;  %v39_v23 = vld [vmem:[%s2036_s0 + $0x28] sm:$0xff]  ;;  %v40_v24 = vld [vmem:[%s2036_s0 + $0x30] sm:$0xff]  ;;  %v41_v25 = vld [vmem:[%s2036_s0 + $0x38] sm:$0xff]  ;;  %s1228_s21 = sshll.u32 %s1708_s20, 4  ;;  %s1229_s21 = int_to_ptr.vmem [resolvable:$true] %s1228_s21 }
   0xb   :  { %1512 = vmatpush3.bf16.msra.mxu1 %v1809_v17  ;;  %v202_v26 = vld [vmem:[%s2042_s6] sm:$0xff]  ;;  %s1632_s22 = scalar_lea.vmem %s1229_s21, 128  ;;  %p1637_p1 = scmp.lt.s32.totalorder %s1229_s21, %s1229_s21 }
   0xc   :  { %1513 = vmatprep.subr.bf16.mxu1 %v1702_v5  ;;  %v1253_v27 = vld [vmem:[%s2039_s3] ss:$0 sm:$0xff]  ;;  %s1705_s3 = smov 64   ;;  %p1633_p0 = scmp.ne.s32.totalorder %s1229_s21, %s1632_s22 }
   0xd   :  { %1500 = vmatpush3.bf16.msra.mxu0 %v1497_v14  ;;  %v203_v48 = vld [vmem:[%s2043_s7] sm:$0xff]  ;;  %p1638_p2 = scmp.lt.s32.totalorder %s1632_s22, %s1632_s22 }
   0xe   :  { %1367 = vmatprep.subr.msk.mxu0 %vm81_vm2, %v48_v18 }
   0xf   :  { %p1639_p3 = por %p1638_p2, %p1637_p1 }
  0x11   :  { %1368 = vmatpush3.msk.msra.mxu0 %vm81_vm2, %v48_v18  ;;  %p1640_p4 = pnand %p1639_p3, %p1633_p0 }
  0x12   :  { %1370 = vmatmul.mubr.msk.f32.vlgmr.msra.gmra.mrb[0].mxu0 %vm56_vm0, %v35_v19  ;;  %1501 = vmatprep.subr.bf16.mxu0 %v1702_v5 }
  0x13   :  { %1503 = vmatpush3.bf16.msra.mxu0 %v1799_v13  ;;  %1372 = vmatprep.mubr.msk.f32.mxu0 %vm56_vm0, %v36_v20 }
  0x14   :  { %1504 = vmatprep.subr.bf16.mxu0 %v1702_v5 }
  0x16   :  { %1373 = vmatmul.mubr.msk.f32.gmra.mrb[2].mxu0 %vm56_vm0, %v37_v21 }
  0x17   :  { %1375 = vmatprep.mubr.msk.f32.mxu0 %vm56_vm0, %v38_v22  ;;  %1506 = vmatpush3.bf16.msra.mxu0 %v1809_v17 }
  0x18   :  { %1519 = vmatprep.subr.bf16.mxu0 %v1702_v5 }
  0x1a   :  { %1376 = vmatmul.mubr.msk.f32.gmra.mrb[4].mxu0 %vm56_vm0, %v39_v23 }
  0x1b   :  { %1378 = vmatprep.mubr.msk.f32.mxu0 %vm56_vm0, %v40_v24 }
  0x1e   :  { %1379 = vmatmul.mubr.msk.f32.gmra.mrb[6].mxu0 %vm56_vm0, %v41_v25 }
  0x1f   :  { %1389 = vmatprep.mubr.msk.f32.mxu0 %vm1703_vm1, %v1704_v10 }
  0x22   :  { %1390 = vmatmul.mubr.msk.f32.vlgmr.msra.gmra.mrb[8].mxu0 %vm205_vm3, %v202_v26 }
  0x23   :  { %1521 = vmatpush3.bf16.msra.mxu0 %v1799_v13  ;;  %1422 = vmatprep.mubr.msk.f32.mxu0 %vm1703_vm1, %v1704_v10 }
  0x24   :  { %1522 = vmatprep.subr.bf16.mxu0 %v1702_v5 }
  0x27   :  { %1524 = vmatpush3.bf16.msra.mxu0 %v1809_v17 }
  0x28   :  { %1531 = vmatprep.subr.bf16.mxu0 %v1702_v5 }
  0xe5   :  { %v1371_v28 = vpop.f32.mrb[0].mxu0 }
  0xe6   :  { %v157_v29 = vadd.f32 %v1371_v28, %v1253_v27  ;;  %v151_v30 = vpop.f32.mrb[1].mxu0 }
  0xe7   :  { %v152_v43 = vadd.f32 %v1253_v27, %v151_v30 }
  0xe9   :  { %v1374_v31 = vpop.f32.mrb[2].mxu0 }
  0xea   :  { %v1864_v32 = vadd.f32 %v1374_v31, %v1253_v27  ;;  %v161_v33 = vpop.f32.mrb[3].mxu0 }
  0xeb   :  { %v1866_v34 = vadd.f32 %v1253_v27, %v161_v33 }
  0xed   :  { %v1377_v35 = vpop.f32.mrb[4].mxu0 }
  0xee   :  { %v1868_v36 = vadd.f32 %v1377_v35, %v1253_v27  ;;  %v171_v37 = vpop.f32.mrb[5].mxu0 }
  0xef   :  { %v1870_v38 = vadd.f32 %v1253_v27, %v171_v37 }
  0xf1   :  { %v1380_v39 = vpop.f32.mrb[6].mxu0 }
  0xf2   :  { %v1872_v40 = vadd.f32 %v1380_v39, %v1253_v27  ;;  %v181_v41 = vpop.f32.mrb[7].mxu0 }
  0xf3   :  { %v1874_v42 = vadd.f32 %v1253_v27, %v181_v41 }
  0xf5   :  { %v275_v44 = vpop.f32.mrb[8].mxu0 }
  0xf6   :  { %v279_v45 = vadd.f32 %v275_v44, %v152_v43  ;;  %v1391_v46 = vpop.f32.mrb[9].mxu0 }
  0xf8   :  { %1568 = vtanh.f32 %v279_v45  ;;  %v1264_v49 = vmul.f32 -1.442695, %v279_v45 }
  0xfa   :  { %1570 = vpow2.f32 %v1264_v49 }
 0x102   :  { %v1569_v47 = vpop.eup %1568 }
 0x103   :  { %293 = vrot.lane.b32.xlu0 %v1569_v47, %s1705_s3 }
 0x104   :  { %v1571_v50 = vpop.eup %1570 }
 0x105   :  { %v283_v51 = vadd.f32 1.0, %v1571_v50 }
 0x107   :  { %288 = vrot.lane.b32.xlu0 %v203_v48, %s1706_s13  ;;  %1572 = vrcp.f32 %v283_v51 }
 0x111   :  { %v1573_v52 = vpop.eup %1572 }
 0x175   :  { %v294_v53 = vpop.permute.xlu0 %293 }
 0x176   :  { %v296_v54 = vmul.f32 %v1573_v52, %v294_v53 }
 0x178   :  { %298 = vrot.lane.b32.xlu1 %v296_v54, %s1706_s13 }
 0x179   :  { %v289_v55 = vpop.permute.xlu0 %288 }
 0x17a   :  { %v291_v56 = vmul.f32 %v1573_v52, %v289_v55 }
 0x1ea   :  { %v299_v57 = vpop.permute.xlu1 %298 }
 0x1eb   :  { %v301_v58 = vadd.f32 %v299_v57, %v291_v56 }
 0x1ed   :  { %1574 = vtanh.f32 %v301_v58 }
 0x1f7   :  { %v1575_v59 = vpop.eup %1574 }
 0x1f8   :  { %304 = vrot.lane.b32.xlu1 %v1575_v59, %s1705_s3 }
 0x26a   :  { %v305_v60 = vpop.permute.xlu1 %304 }
 0x26b   :  { %v307_v61 = vmul.f32 %v1573_v52, %v305_v60 }
 0x26d   :  { %309 = vrot.lane.b32.xlu0 %v307_v61, %s1706_s13 }
 0x2df   :  { %v310_v62 = vpop.permute.xlu0 %309 }
 0x2e0   :  { %312 = vst.msk [vmem:[#allocation3] sm:$0xff] %vm205_vm3, %v310_v62  ;;  %1401 = vmatmul.mubr.msk.f32.vlgmr.msra.gmra.mrb[0].mxu1 %vm205_vm3, %v310_v62 }
 0x2e1   :  { %1515 = vmatpush3.bf16.msra.mxu1 %v1799_v13  ;;  %1411 = vmatprep.mubr.msk.f32.mxu1 %vm1703_vm1, %v1704_v10 }
 0x2e2   :  { %1516 = vmatprep.subr.bf16.mxu1 %v1702_v5 }
 0x2e5   :  { %1518 = vmatpush3.bf16.msra.mxu1 %v1809_v17 }
 0x2e6   :  { %1525 = vmatprep.subr.bf16.mxu1 %v1702_v5 }
 0x3b3   :  { %v383_v63 = vpop.f32.mrb[0].mxu1 }
 0x3b4   :  { %v387_v0 = vadd.f32 %v383_v63, %v157_v29  ;;  %v1402_v1 = vpop.f32.mrb[1].mxu1 }
 0x3b6   :  { %1576 = vtanh.f32 %v387_v0  ;;  %v1266_v3 = vmul.f32 -1.442695, %v387_v0 }
 0x3b8   :  { %1578 = vpow2.f32 %v1266_v3 }
 0x3c0   :  { %v1577_v2 = vpop.eup %1576 }
 0x3c1   :  { %397 = vrot.lane.b32.xlu1 %v1577_v2, %s1705_s3 }
 0x3c2   :  { %v1579_v4 = vpop.eup %1578 }
 0x3c3   :  { %v391_v6 = vadd.f32 1.0, %v1579_v4 }
 0x3c5   :  { %1580 = vrcp.f32 %v391_v6 }
 0x3cf   :  { %v1581_v7 = vpop.eup %1580 }
 0x3d0   :  { %v395_v11 = vmul.f32 %v1581_v7, %v301_v58 }
 0x433   :  { %v398_v8 = vpop.permute.xlu1 %397 }
 0x434   :  { %v400_v9 = vmul.f32 %v1581_v7, %v398_v8 }
 0x436   :  { %402 = vrot.lane.b32.xlu0 %v400_v9, %s1706_s13 }
 0x4a8   :  { %v403_v12 = vpop.permute.xlu0 %402 }
 0x4a9   :  { %v405_v14 = vadd.f32 %v403_v12, %v395_v11 }
 0x4ab   :  { %1582 = vtanh.f32 %v405_v14 }
 0x4b5   :  { %v1583_v15 = vpop.eup %1582 }
 0x4b6   :  { %408 = vrot.lane.b32.xlu1 %v1583_v15, %s1705_s3 }
 0x528   :  { %v409_v16 = vpop.permute.xlu1 %408 }
 0x529   :  { %v411_v18 = vmul.f32 %v1581_v7, %v409_v16 }
 0x52b   :  { %413 = vrot.lane.b32.xlu0 %v411_v18, %s1706_s13 }
 0x59d   :  { %v414_v19 = vpop.permute.xlu0 %413 }
 0x59e   :  { %417 = vst.msk [vmem:[#allocation3 + $0x8] sm:$0xff] %vm205_vm3, %v414_v19  ;;  %1412 = vmatmul.mubr.msk.f32.vlgmr.msra.gmra.mrb[2].mxu1 %vm205_vm3, %v414_v19 }
 0x59f   :  { %1527 = vmatpush3.bf16.msra.mxu1 %v1799_v13  ;;  %1433 = vmatprep.mubr.msk.f32.mxu1 %vm1703_vm1, %v1704_v10 }
 0x5a0   :  { %1528 = vmatprep.subr.bf16.mxu1 %v1702_v5 }
 0x5a3   :  { %1530 = vmatpush3.bf16.msra.mxu1 %v1809_v17 }
 0x5a4   :  { %1537 = vmatprep.subr.bf16.mxu1 %v1702_v5 }
 0x671   :  { %v488_v20 = vpop.f32.mrb[2].mxu1 }
 0x672   :  { %v492_v21 = vadd.f32 %v488_v20, %v1866_v34  ;;  %v1413_v22 = vpop.f32.mrb[3].mxu1 }
 0x674   :  { %1584 = vtanh.f32 %v492_v21  ;;  %v1268_v24 = vmul.f32 -1.442695, %v492_v21 }
 0x676   :  { %1586 = vpow2.f32 %v1268_v24 }
 0x67e   :  { %v1585_v23 = vpop.eup %1584 }
 0x67f   :  { %502 = vrot.lane.b32.xlu1 %v1585_v23, %s1705_s3  ;;  %v1063_v23 = vld [vmem:[%s2040_s4 + $0x8] sm:$0xff] }
 0x680   :  { %v1587_v25 = vpop.eup %1586 }
 0x681   :  { %v496_v26 = vadd.f32 1.0, %v1587_v25 }
 0x683   :  { %1588 = vrcp.f32 %v496_v26 }
 0x68d   :  { %v1589_v27 = vpop.eup %1588 }
 0x68e   :  { %v500_v30 = vmul.f32 %v1589_v27, %v405_v14 }
 0x6f1   :  { %v503_v28 = vpop.permute.xlu1 %502 }
 0x6f2   :  { %v505_v29 = vmul.f32 %v1589_v27, %v503_v28  ;;  %v1064_v28 = vld [vmem:[%s2040_s4 + $0x10] sm:$0xff] }
 0x6f4   :  { %507 = vrot.lane.b32.xlu0 %v505_v29, %s1706_s13  ;;  %v1065_v29 = vld [vmem:[%s2040_s4 + $0x18] sm:$0xff] }
 0x766   :  { %v508_v31 = vpop.permute.xlu0 %507 }
 0x767   :  { %v510_v33 = vadd.f32 %v508_v31, %v500_v30  ;;  %v1553_v30 = vpack.c.bf16 %v1065_v29, %v1064_v28 }
 0x769   :  { %1590 = vtanh.f32 %v510_v33 }
 0x773   :  { %v1591_v34 = vpop.eup %1590 }
 0x774   :  { %513 = vrot.lane.b32.xlu1 %v1591_v34, %s1705_s3  ;;  %v1055_v34 = vld [vmem:[#allocation3 + $0x8] sm:$0xff] }
 0x7e6   :  { %v514_v35 = vpop.permute.xlu1 %513 }
 0x7e7   :  { %v516_v37 = vmul.f32 %v1589_v27, %v514_v35 }
 0x7e9   :  { %518 = vrot.lane.b32.xlu0 %v516_v37, %s1706_s13 }
 0x85b   :  { %v519_v39 = vpop.permute.xlu0 %518 }
 0x85c   :  { %522 = vst.msk [vmem:[#allocation3 + $0x10] sm:$0xff] %vm205_vm3, %v519_v39  ;;  %1423 = vmatmul.mubr.msk.f32.vlgmr.msra.gmra.mrb[10].mxu0 %vm205_vm3, %v519_v39 }
 0x85d   :  { %1533 = vmatpush3.bf16.msra.mxu0 %v1799_v13  ;;  %1444 = vmatprep.mubr.msk.f32.mxu0 %vm1703_vm1, %v1704_v10 }
 0x85e   :  { %1534 = vmatprep.subr.bf16.mxu0 %v1702_v5 }
 0x861   :  { %1536 = vmatpush3.bf16.msra.mxu0 %v1809_v17 }
 0x862   :  { %1543 = vmatprep.subr.bf16.mxu0 %v1702_v5 }
 0x863   :  { %v1056_v35 = vld [vmem:[#allocation3 + $0x10] sm:$0xff] }
 0x92f   :  { %v593_v41 = vpop.f32.mrb[10].mxu0 }
 0x930   :  { %v597_v43 = vadd.f32 %v593_v41, %v1864_v32  ;;  %v1424_v44 = vpop.f32.mrb[11].mxu0 }
 0x932   :  { %1592 = vtanh.f32 %v597_v43  ;;  %v1270_v46 = vmul.f32 -1.442695, %v597_v43 }
 0x934   :  { %1594 = vpow2.f32 %v1270_v46  ;;  %v1973_v46 = vld [vmem:[%s2041_s5] ss:$0 sm:$0xff]  ;;  %s1707_s5 = smov 96  }
 0x93c   :  { %v1593_v45 = vpop.eup %1592 }
 0x93d   :  { %607 = vrot.lane.b32.xlu1 %v1593_v45, %s1705_s3 }
 0x93e   :  { %v1595_v47 = vpop.eup %1594 }
 0x93f   :  { %v601_v48 = vadd.f32 1.0, %v1595_v47 }
 0x941   :  { %1596 = vrcp.f32 %v601_v48 }
 0x94b   :  { %v1597_v49 = vpop.eup %1596 }
 0x94c   :  { %v605_v52 = vmul.f32 %v1597_v49, %v510_v33  ;;  %v1054_v33 = vld [vmem:[#allocation3] sm:$0xff] }
 0x9af   :  { %v608_v50 = vpop.permute.xlu1 %607 }
 0x9b0   :  { %v610_v51 = vmul.f32 %v1597_v49, %v608_v50 }
 0x9b2   :  { %612 = vrot.lane.b32.xlu0 %v610_v51, %s1706_s13 }
 0xa24   :  { %v613_v53 = vpop.permute.xlu0 %612 }
 0xa25   :  { %v615_v54 = vadd.f32 %v613_v53, %v605_v52 }
 0xa27   :  { %1598 = vtanh.f32 %v615_v54 }
 0xa31   :  { %v1599_v32 = vpop.eup %1598 }
 0xa32   :  { %618 = vrot.lane.b32.xlu1 %v1599_v32, %s1705_s3 }
 0xaa4   :  { %v619_v55 = vpop.permute.xlu1 %618 }
 0xaa5   :  { %v621_v56 = vmul.f32 %v1597_v49, %v619_v55 }
 0xaa7   :  { %623 = vrot.lane.b32.xlu0 %v621_v56, %s1706_s13 }
 0xb19   :  { %v624_v57 = vpop.permute.xlu0 %623 }
 0xb1a   :  { %627 = vst.msk [vmem:[#allocation3 + $0x18] sm:$0xff] %vm205_vm3, %v624_v57  ;;  %1434 = vmatmul.mubr.msk.f32.vlgmr.msra.gmra.mrb[4].mxu1 %vm205_vm3, %v624_v57 }
 0xb1b   :  { %1539 = vmatpush3.bf16.msra.mxu1 %v1799_v13  ;;  %1455 = vmatprep.mubr.msk.f32.mxu1 %vm1703_vm1, %v1704_v10 }
 0xb1c   :  { %1540 = vmatprep.subr.bf16.mxu1 %v1702_v5 }
 0xb1f   :  { %1542 = vmatpush3.bf16.msra.mxu1 %v1809_v17 }
 0xb21   :  { %v1057_v37 = vld [vmem:[#allocation3 + $0x18] sm:$0xff] }
 0xbed   :  { %v698_v58 = vpop.f32.mrb[4].mxu1 }
 0xbee   :  { %v702_v59 = vadd.f32 %v698_v58, %v1870_v38  ;;  %v1435_v60 = vpop.f32.mrb[5].mxu1 }
 0xbf0   :  { %1600 = vtanh.f32 %v702_v59  ;;  %v1272_v62 = vmul.f32 -1.442695, %v702_v59 }
 0xbf2   :  { %1602 = vpow2.f32 %v1272_v62 }
 0xbfa   :  { %v1601_v61 = vpop.eup %1600 }
 0xbfb   :  { %712 = vrot.lane.b32.xlu1 %v1601_v61, %s1705_s3 }
 0xbfc   :  { %v1603_v63 = vpop.eup %1602 }
 0xbfd   :  { %v706_v0 = vadd.f32 1.0, %v1603_v63 }
 0xbff   :  { %1604 = vrcp.f32 %v706_v0 }
 0xc09   :  { %v1605_v1 = vpop.eup %1604 }
 0xc0a   :  { %v710_v4 = vmul.f32 %v1605_v1, %v615_v54 }
 0xc6d   :  { %v713_v2 = vpop.permute.xlu1 %712 }
 0xc6e   :  { %v715_v3 = vmul.f32 %v1605_v1, %v713_v2 }
 0xc70   :  { %717 = vrot.lane.b32.xlu0 %v715_v3, %s1706_s13 }
 0xce2   :  { %v718_v6 = vpop.permute.xlu0 %717 }
 0xce3   :  { %v720_v7 = vadd.f32 %v718_v6, %v710_v4 }
 0xce5   :  { %1606 = vtanh.f32 %v720_v7 }
 0xcef   :  { %v1607_v38 = vpop.eup %1606 }
 0xcf0   :  { %723 = vrot.lane.b32.xlu1 %v1607_v38, %s1705_s3 }
 0xd62   :  { %v724_v8 = vpop.permute.xlu1 %723 }
 0xd63   :  { %v726_v9 = vmul.f32 %v1605_v1, %v724_v8 }
 0xd65   :  { %728 = vrot.lane.b32.xlu0 %v726_v9, %s1706_s13 }
 0xdd7   :  { %v729_v11 = vpop.permute.xlu0 %728 }
 0xdd8   :  { %732 = vst.msk [vmem:[#allocation3 + $0x20] sm:$0xff] %vm205_vm3, %v729_v11  ;;  %1445 = vmatmul.mubr.msk.f32.vlgmr.msra.gmra.mrb[12].mxu0 %vm205_vm3, %v729_v11 }
 0xdd9   :  { %1545 = vmatpush3.bf16.msra.mxu0 %v1799_v13  ;;  %1466 = vmatprep.mubr.msk.f32.mxu0 %vm1703_vm1, %v1704_v10 }
 0xdda   :  { %1546 = vmatprep.subr.bf16.mxu0 %v1702_v5 }
 0xddd   :  { %1548 = vmatpush3.bf16.msra.mxu0 %v1809_v17 }
 0xddf   :  { %v1058_v39 = vld [vmem:[#allocation3 + $0x20] sm:$0xff] }
 0xeab   :  { %v803_v12 = vpop.f32.mrb[12].mxu0 }
 0xeac   :  { %v807_v14 = vadd.f32 %v803_v12, %v1868_v36  ;;  %v1446_v15 = vpop.f32.mrb[13].mxu0  ;;  %v1062_v36 = vld [vmem:[%s2040_s4] sm:$0xff] }
 0xead   :  { %v1549_v24 = vpack.c.bf16 %v1063_v23, %v1062_v36 }
 0xeae   :  { %1608 = vtanh.f32 %v807_v14  ;;  %v1274_v18 = vmul.f32 -1.442695, %v807_v14 }
 0xeaf   :  { %1550 = vmatprep.subr.bf16.mxu1 %v1549_v24 }
 0xeb0   :  { %1610 = vpow2.f32 %v1274_v18 }
 0xeb8   :  { %v1609_v16 = vpop.eup %1608 }
 0xeb9   :  { %817 = vrot.lane.b32.xlu1 %v1609_v16, %s1705_s3 }
 0xeba   :  { %v1611_v19 = vpop.eup %1610 }
 0xebb   :  { %v811_v20 = vadd.f32 1.0, %v1611_v19 }
 0xebd   :  { %1612 = vrcp.f32 %v811_v20 }
 0xec7   :  { %v1613_v13 = vpop.eup %1612 }
 0xec8   :  { %v815_v5 = vmul.f32 %v1613_v13, %v720_v7 }
 0xf2b   :  { %v818_v21 = vpop.permute.xlu1 %817 }
 0xf2c   :  { %v820_v10 = vmul.f32 %v1613_v13, %v818_v21 }
 0xf2e   :  { %822 = vrot.lane.b32.xlu0 %v820_v10, %s1706_s13 }
 0xfa0   :  { %v823_v17 = vpop.permute.xlu0 %822 }
 0xfa1   :  { %v1944_v22 = vadd.f32 %v823_v17, %v815_v5 }
 0xfa3   :  { %1614 = vtanh.f32 %v1944_v22 }
 0xfad   :  { %v1615_v25 = vpop.eup %1614 }
 0xfae   :  { %828 = vrot.lane.b32.xlu1 %v1615_v25, %s1705_s3 }
0x1020   :  { %v829_v26 = vpop.permute.xlu1 %828 }
0x1021   :  { %v831_v27 = vmul.f32 %v1613_v13, %v829_v26 }
0x1023   :  { %833 = vrot.lane.b32.xlu0 %v831_v27, %s1706_s13 }
0x1095   :  { %v834_v31 = vpop.permute.xlu0 %833 }
0x1096   :  { %837 = vst.msk [vmem:[#allocation3 + $0x28] sm:$0xff] %vm205_vm3, %v834_v31  ;;  %1456 = vmatmul.mubr.msk.f32.vlgmr.msra.gmra.mrb[6].mxu1 %vm205_vm3, %v834_v31 }
0x1097   :  { %1552 = vmatpush3.bf16.msra.mxu1 %v1549_v24  ;;  %1477 = vmatprep.mubr.msk.f32.mxu1 %vm205_vm3, %v1054_v33 }
0x1098   :  { %1554 = vmatprep.subr.bf16.mxu1 %v1553_v30 }
0x109b   :  { %1556 = vmatpush3.bf16.msra.mxu1 %v1553_v30 }
0x109d   :  { %v1059_v41 = vld [vmem:[#allocation3 + $0x28] sm:$0xff] }
0x109e   :  { %1478 = vmatmul.mubr.msk.f32.vlgmr.msra.gmra.mrb[8].mxu1 %vm205_vm3, %v1055_v34 }
0x109f   :  { %1480 = vmatprep.mubr.msk.f32.mxu1 %vm205_vm3, %v1056_v35 }
0x10a2   :  { %1481 = vmatmul.mubr.msk.f32.gmra.mrb[10].mxu1 %vm205_vm3, %v1057_v37 }
0x10a3   :  { %1483 = vmatprep.mubr.msk.f32.mxu1 %vm205_vm3, %v1058_v39 }
0x10a6   :  { %1484 = vmatmul.mubr.msk.f32.gmra.mrb[12].mxu1 %vm205_vm3, %v1059_v41 }
0x1169   :  { %v908_v43 = vpop.f32.mrb[6].mxu1 }
0x116a   :  { %v912_v44 = vadd.f32 %v908_v43, %v1874_v42  ;;  %v1457_v45 = vpop.f32.mrb[7].mxu1 }
0x116c   :  { %1616 = vtanh.f32 %v912_v44  ;;  %v1276_v58 = vmul.f32 -1.442695, %v912_v44 }
0x116e   :  { %1618 = vpow2.f32 %v1276_v58 }
0x1171   :  { %v1479_v47 = vpop.f32.mrb[8].mxu1 }
0x1172   :  { %v1169_v48 = vadd.f32 %v1479_v47, %v1973_v46  ;;  %v1163_v49 = vpop.f32.mrb[9].mxu1 }
0x1173   :  { %v1164_v50 = vadd.f32 %v1973_v46, %v1163_v49 }
0x1174   :  { %1203 = vst [vmem:[#allocation4 + $0x8] sm:$0xff] %v1169_v48 }
0x1175   :  { %1202 = vst [vmem:[#allocation4] sm:$0xff] %v1164_v50  ;;  %v1482_v51 = vpop.f32.mrb[10].mxu1 }
0x1176   :  { %v1617_v52 = vpop.eup %1616  ;;  %v1179_v53 = vadd.f32 %v1482_v51, %v1973_v46  ;;  %v1173_v42 = vpop.f32.mrb[11].mxu1 }
0x1177   :  { %v1174_v54 = vadd.f32 %v1973_v46, %v1173_v42  ;;  %922 = vrot.lane.b32.xlu1 %v1617_v52, %s1705_s3 }
0x1178   :  { %1205 = vst [vmem:[#allocation4 + $0x18] sm:$0xff] %v1179_v53  ;;  %v1619_v59 = vpop.eup %1618 }
0x1179   :  { %1204 = vst [vmem:[#allocation4 + $0x10] sm:$0xff] %v1174_v54  ;;  %v1485_v32 = vpop.f32.mrb[12].mxu1  ;;  %v916_v60 = vadd.f32 1.0, %v1619_v59 }
0x117a   :  { %v1189_v55 = vadd.f32 %v1485_v32, %v1973_v46  ;;  %v1183_v56 = vpop.f32.mrb[13].mxu1 }
0x117b   :  { %v1184_v57 = vadd.f32 %v1973_v46, %v1183_v56  ;;  %1620 = vrcp.f32 %v916_v60 }
0x117c   :  { %1207 = vst [vmem:[#allocation4 + $0x28] sm:$0xff] %v1189_v55 }
0x117d   :  { %1206 = vst [vmem:[#allocation4 + $0x20] sm:$0xff] %v1184_v57 }
0x1185   :  { %v1621_v61 = vpop.eup %1620 }
0x1186   :  { %v920_v0 = vmul.f32 %v1621_v61, %v1944_v22 }
0x11e9   :  { %v923_v62 = vpop.permute.xlu1 %922 }
0x11ea   :  { %v925_v63 = vmul.f32 %v1621_v61, %v923_v62 }
0x11ec   :  { %927 = vrot.lane.b32.xlu0 %v925_v63, %s1706_s13 }
0x125e   :  { %v928_v1 = vpop.permute.xlu0 %927 }
0x125f   :  { %v930_v2 = vadd.f32 %v928_v1, %v920_v0 }
0x1261   :  { %1622 = vtanh.f32 %v930_v2 }
0x126b   :  { %v1623_v3 = vpop.eup %1622 }
0x126c   :  { %933 = vrot.lane.b32.xlu1 %v1623_v3, %s1705_s3 }
0x12de   :  { %v934_v4 = vpop.permute.xlu1 %933 }
0x12df   :  { %v936_v6 = vmul.f32 %v1621_v61, %v934_v4 }
0x12e1   :  { %938 = vrot.lane.b32.xlu0 %v936_v6, %s1706_s13 }
0x1353   :  { %v939_v7 = vpop.permute.xlu0 %938 }
0x1354   :  { %942 = vst.msk [vmem:[#allocation3 + $0x30] sm:$0xff] %vm205_vm3, %v939_v7  ;;  %1467 = vmatmul.mubr.msk.f32.vlgmr.msra.gmra.mrb[14].mxu0 %vm205_vm3, %v939_v7 }
0x135b   :  { %v1060_v38 = vld [vmem:[#allocation3 + $0x30] sm:$0xff] }
0x135c   :  { %1486 = vmatprep.mubr.msk.f32.mxu1 %vm205_vm3, %v1060_v38 }
0x1427   :  { %v1013_v8 = vpop.f32.mrb[14].mxu0 }
0x1428   :  { %v1017_v9 = vadd.f32 %v1013_v8, %v1872_v40  ;;  %v1468_v11 = vpop.f32.mrb[15].mxu0 }
0x142a   :  { %1624 = vtanh.f32 %v1017_v9  ;;  %v1278_v14 = vmul.f32 -1.442695, %v1017_v9 }
0x142c   :  { %1626 = vpow2.f32 %v1278_v14 }
0x1434   :  { %v1625_v12 = vpop.eup %1624 }
0x1435   :  { %1027 = vrot.lane.b32.xlu1 %v1625_v12, %s1705_s3 }
0x1436   :  { %v1627_v15 = vpop.eup %1626 }
0x1437   :  { %v1021_v16 = vadd.f32 1.0, %v1627_v15 }
0x1439   :  { %1628 = vrcp.f32 %v1021_v16 }
0x1443   :  { %v1629_v18 = vpop.eup %1628 }
0x1444   :  { %v1025_v13 = vmul.f32 %v1629_v18, %v930_v2 }
0x14a7   :  { %v1028_v19 = vpop.permute.xlu1 %1027 }
0x14a8   :  { %v1030_v20 = vmul.f32 %v1629_v18, %v1028_v19 }
0x14aa   :  { %1032 = vrot.lane.b32.xlu0 %v1030_v20, %s1706_s13 }
0x151c   :  { %v1033_v21 = vpop.permute.xlu0 %1032 }
0x151d   :  { %v1035_v10 = vadd.f32 %v1033_v21, %v1025_v13 }
0x151f   :  { %1630 = vtanh.f32 %v1035_v10 }
0x1529   :  { %v1631_v40 = vpop.eup %1630 }
0x152a   :  { %1038 = vrot.lane.b32.xlu1 %v1631_v40, %s1705_s3 }
0x152e   :  { %1050 = vrot.lane.b32.xlu1 %v1035_v10, %s1707_s5 }
0x159c   :  { %v1039_v5 = vpop.permute.xlu1 %1038 }
0x159d   :  { %v1041_v17 = vmul.f32 %v1629_v18, %v1039_v5 }
0x159f   :  { %1043 = vrot.lane.b32.xlu0 %v1041_v17, %s1706_s13 }
0x15a0   :  { %v1051_v22 = vpop.permute.xlu1 %1050 }
0x15a1   :  { %1053 = vst.msk [vmem:[#allocation8] sm:$0xff] %vm205_vm3, %v1051_v22 }
0x1611   :  { %v1044_v36 = vpop.permute.xlu0 %1043 }
0x1612   :  { %1047 = vst.msk [vmem:[#allocation3 + $0x38] sm:$0xff] %vm205_vm3, %v1044_v36  ;;  %1048 = vst.msk [vmem:[#allocation6] sm:$0xff] %vm205_vm3, %v1044_v36 }
0x1619   :  { %v1061_v23 = vld [vmem:[#allocation3 + $0x38] sm:$0xff] }
0x161a   :  { %1487 = vmatmul.mubr.msk.f32.gmra.mrb[14].mxu1 %vm205_vm3, %v1061_v23 }
0x161b   :  { %1643 = shalt.err (!%p1640_p4)
}
0x161c   :  { %s1644_s25 = scalar_lea.hbm %s2045_s9, 128 }
0x161d   :  { %p1645_p5 = scmp.ne.s32.totalorder %s2045_s9, %s1644_s25  ;;  %p1648_p6 = scmp.lt.u32.totalorder %s1644_s25, %s2045_s9 }
0x161f   :  { %p1650_p7 = pnand %p1648_p6, %p1645_p5 }
0x1621   :  { %1653 = shalt.err (!%p1650_p7)
}
0x1622   :  { %1231 = dma.vmem_to_hbm [thread:$0]  %s1229_s21, 128, %s2045_s9, [#allocation7]  }
0x1623   :  { %s1709_s11 = smov [#allocation8]  }
0x1624   :  { %s1238_s3 = sshll.u32 %s1709_s11, 4  ;;  %s1239_s3 = int_to_ptr.vmem [resolvable:$true] %s1238_s3 }
0x1625   :  { %s1654_s6 = scalar_lea.vmem %s1239_s3, 128  ;;  %p1659_p9 = scmp.lt.s32.totalorder %s1239_s3, %s1239_s3 }
0x1626   :  { %p1655_p8 = scmp.ne.s32.totalorder %s1239_s3, %s1654_s6  ;;  %p1660_p10 = scmp.lt.s32.totalorder %s1654_s6, %s1654_s6 }
0x1628   :  { %p1661_p11 = por %p1660_p10, %p1659_p9 }
0x162a   :  { %p1662_p12 = pnand %p1661_p11, %p1655_p8 }
0x162c   :  { %1665 = shalt.err (!%p1662_p12)
}
0x162d   :  { %s1666_s7 = scalar_lea.hbm %s2046_s10, 128 }
0x162e   :  { %p1667_p13 = scmp.ne.s32.totalorder %s2046_s10, %s1666_s7  ;;  %p1670_p0 = scmp.lt.u32.totalorder %s1666_s7, %s2046_s10 }
0x1630   :  { %p1672_p1 = pnand %p1670_p0, %p1667_p13 }
0x1632   :  { %1675 = shalt.err (!%p1672_p1)
}
0x1633   :  { %1241 = dma.vmem_to_hbm [thread:$0]  %s1239_s3, 128, %s2046_s10, [#allocation7]  }
0x1634   :  { %s1710_s18 = smov [#allocation4]  }
0x1635   :  { %s1215_s19 = sshll.u32 %s1710_s18, 4  ;;  %s1216_s19 = int_to_ptr.vmem [resolvable:$true] %s1215_s19 }
0x1636   :  { %s1676_s4 = scalar_lea.vmem %s1216_s19, 1024  ;;  %p1681_p3 = scmp.lt.s32.totalorder %s1216_s19, %s1216_s19 }
0x1637   :  { %p1677_p2 = scmp.ne.s32.totalorder %s1216_s19, %s1676_s4  ;;  %p1682_p4 = scmp.lt.s32.totalorder %s1676_s4, %s1676_s4 }
0x1639   :  { %p1683_p5 = por %p1682_p4, %p1681_p3 }
0x163b   :  { %p1684_p6 = pnand %p1683_p5, %p1677_p2 }
0x16ed   :  { %v1488_v24 = vpop.f32.mrb[14].mxu1 }
0x16ee   :  { %v1199_v25 = vadd.f32 %v1488_v24, %v1973_v46  ;;  %v1193_v26 = vpop.f32.mrb[15].mxu1 }
0x16ef   :  { %v1194_v27 = vadd.f32 %v1973_v46, %v1193_v26 }
0x16f0   :  { %1209 = vst [vmem:[#allocation4 + $0x38] sm:$0xff] %v1199_v25 }
0x16f1   :  { %1208 = vst [vmem:[#allocation4 + $0x30] sm:$0xff] %v1194_v27 }
0x16f2   :  { %1687 = shalt.err (!%p1684_p6)
}
0x16f3   :  { %s1688_s5 = scalar_lea.hbm %s2044_s8, 1024 }
0x16f4   :  { %p1689_p7 = scmp.ne.s32.totalorder %s2044_s8, %s1688_s5  ;;  %p1692_p8 = scmp.lt.u32.totalorder %s1688_s5, %s2044_s8 }
0x16f6   :  { %p1694_p9 = pnand %p1692_p8, %p1689_p7 }
0x16f8   :  { %1697 = shalt.err (!%p1694_p9)
}
0x16f9   :  { %s1711_s24 = smov 128   ;;  %s1712_s25 = smov 8  }
0x16fa   :  { %1221 = dma.vmem_to_hbm [thread:$0]  %s1216_s19, 1024, %s2044_s8, [#allocation5], %s1711_s24, %s1711_s24, %s1712_s25  }
0x16fb   :  { %1698 = dma.done.wait [#allocation5], 1024  }
0x16fc   :  { %1699 = vsyncadd [#allocation5], 4294966272 }
0x16fd   :  { %1700 = dma.done.wait [#allocation7], 256  }
0x16fe   :  { %1701 = vsyncadd [#allocation7], 4294967040 }
0x16ff   :  { %1251 = vsyncpa [#allocation5], 1 }
0x1700   :  { %1252 = vsyncpa [#allocation7], 1 }

</bundles_post_ra>
